<compile_context>
chip_gen: v6e
topology: v6e:2x2x1
jax: 0.10.0
libtpu: 0.0.40
codegen_flags: <defaults>
</compile_context>

<pallas_src>
import jax
import jax.numpy as jnp
from jax.experimental import pallas as pl
from jax.experimental.pallas import tpu as pltpu


# ---------------------------------------------------------------------------
# Kernel: fused 3-layer MLP over the whole ensemble, reductions baked into W3.
# ---------------------------------------------------------------------------
def _fused_mlp_kernel(x_ref, w1_ref, w2_ref, w3_ref, b_ref, out_ref):
    nh1 = w1_ref.shape[1]
    nh2 = w2_ref.shape[1]
    out_w = w3_ref.shape[1]
    # bf16 operands -> native MXU path; f32 accumulation; f32 bias-add / ReLU.
    x = x_ref[...].astype(jnp.bfloat16)
    h1 = jnp.maximum(
        jnp.dot(x, w1_ref[...], preferred_element_type=jnp.float32)
        + b_ref[0:1, :nh1], 0.0)                                  # (B, N*H1)
    h2 = jnp.maximum(
        jnp.dot(h1.astype(jnp.bfloat16), w2_ref[...],
                preferred_element_type=jnp.float32)
        + b_ref[1:2, :nh2], 0.0)                                  # (B, N*H2)
    out_ref[...] = (
        jnp.dot(h2.astype(jnp.bfloat16), w3_ref[...],
                preferred_element_type=jnp.float32)
        + b_ref[2:3, :out_w])                                     # (B, OUT_W)


# ---------------------------------------------------------------------------
# One-time (per parameter update) weight fusion — hoisted off the forward path.
# ---------------------------------------------------------------------------
def prepare_fused_params(params, transform_matrix, weight_dtype=jnp.bfloat16):
    """Fuse the ensemble into lane-dense weights.  Returns (fused, dims)."""
    w1, b1, w2, b2, w3, b3 = (params["w1"], params["b1"], params["w2"],
                              params["b2"], params["w3"], params["b3"])
    N, D, H1 = w1.shape
    H2 = w2.shape[2]
    A = w3.shape[2]
    K = transform_matrix.shape[1]
    NH1, NH2 = N * H1, N * H2

    eye = jnp.eye(N, dtype=jnp.float32)

    # Layer 1: concatenate per-network output columns.
    w1f = jnp.transpose(w1, (1, 0, 2)).reshape(D, NH1)
    b1f = b1.reshape(NH1)

    # Layer 2: block-diagonal (each network only sees its own layer-1 slice).
    w2f = jnp.einsum('npq,nm->npmq', w2, eye).reshape(NH1, NH2)
    b2f = b2.reshape(NH2)

    # Layer 3, augmented with the REM reductions as extra output columns.
    b3_2d = b3.reshape(N, A)
    # (a, n)-ordered raw Q columns -> reshape(B, A, N) directly, no transpose.
    w3_raw = jnp.einsum('nha,nm->nham', w3, eye).reshape(NH2, A * N)
    b3_raw = b3_2d.T.reshape(A * N)
    # (a, k)-ordered stochastic-transform heads: tm baked into the weights.
    w3_tr = jnp.einsum('nha,nk->nhak', w3, transform_matrix).reshape(NH2, A * K)
    b3_tr = jnp.einsum('na,nk->ak', b3_2d, transform_matrix).reshape(A * K)
    # Ensemble-mean columns (q_values).
    w3_mean = w3.reshape(NH2, A) / N
    b3_mean = jnp.mean(b3_2d, axis=0)

    raw_w = A * N + A * K + A
    out_w = pl.cdiv(raw_w, 128) * 128           # lane-dense, unmasked stores
    w3f = jnp.concatenate([w3_raw, w3_tr, w3_mean], axis=1)
    b3f = jnp.concatenate([b3_raw, b3_tr, b3_mean], axis=0)
    w3f = jnp.pad(w3f, ((0, 0), (0, out_w - raw_w)))
    b3f = jnp.pad(b3f, (0, out_w - raw_w))

    # Pack the three biases into one (8, width) f32 array -> one DMA descriptor.
    bw = max(NH1, NH2, out_w)
    bias_pack = jnp.zeros((8, bw), jnp.float32)
    bias_pack = bias_pack.at[0, :NH1].set(b1f)
    bias_pack = bias_pack.at[1, :NH2].set(b2f)
    bias_pack = bias_pack.at[2, :out_w].set(b3f)

    fused = {
        "w1f": w1f.astype(weight_dtype),
        "w2f": w2f.astype(weight_dtype),
        "w3f": w3f.astype(weight_dtype),
        "bias": bias_pack,
    }
    return fused, (N, A, K)


# ---------------------------------------------------------------------------
# Forward pass (per-step work: one pallas_call + cheap slices).
# ---------------------------------------------------------------------------
def multi_network_q_forward(state, fused, *, dims):
    """Returns (q_networks [B,A,K], unordered_q_networks [B,A,N], q_values [B,A])."""
    N, A, K = dims
    w1f, w2f, w3f, bias = fused["w1f"], fused["w2f"], fused["w3f"], fused["bias"]
    B = state.shape[0]
    D, NH1 = w1f.shape
    NH2, OUT_W = w3f.shape

    cost = pl.CostEstimate(
        flops=2 * B * (D * NH1 + NH1 * NH2 + NH2 * OUT_W),
        transcendentals=0,
        bytes_accessed=(2 * (D * NH1 + NH1 * NH2 + NH2 * OUT_W)     # bf16 weights
                        + 4 * (B * D + bias.size + B * OUT_W)),     # f32 x/bias/out
    )

    vmem = pl.BlockSpec(memory_space=pltpu.MemorySpace.VMEM)
    out = pl.pallas_call(
        _fused_mlp_kernel,
        out_shape=jax.ShapeDtypeStruct((B, OUT_W), jnp.float32),
        in_specs=[vmem] * 5,
        out_specs=vmem,
        cost_estimate=cost,
    )(state, w1f, w2f, w3f, bias)

    NA, AK = N * A, A * K
    unordered = out[:, :NA].reshape(B, A, N)
    q_networks = out[:, NA:NA + AK].reshape(B, A, K)
    q_values = out[:, NA + AK:NA + AK + A]
    return q_networks, unordered, q_values


# ---------------------------------------------------------------------------
# Test harness.
# ---------------------------------------------------------------------------
def _init_params(key, num_networks, input_dim, hidden_sizes, output_dim):
    h1, h2 = hidden_sizes
    ks = jax.random.split(key, 6)
    scale = 0.1
    return {
        "w1": scale * jax.random.normal(ks[0], (num_networks, input_dim, h1), jnp.float32),
        "b1": scale * jax.random.normal(ks[1], (num_networks, 1, h1), jnp.float32),
        "w2": scale * jax.random.normal(ks[2], (num_networks, h1, h2), jnp.float32),
        "b2": scale * jax.random.normal(ks[3], (num_networks, 1, h2), jnp.float32),
        "w3": scale * jax.random.normal(ks[4], (num_networks, h2, output_dim), jnp.float32),
        "b3": scale * jax.random.normal(ks[5], (num_networks, 1, output_dim), jnp.float32),
    }


def _reference_forward(state, params, tm):
    # Pure-JAX f32 reference of the PyTorch module's forward.
    qs = []
    N = params["w1"].shape[0]
    for n in range(N):
        h1 = jax.nn.relu(state @ params["w1"][n] + params["b1"][n][0])
        h2 = jax.nn.relu(h1 @ params["w2"][n] + params["b2"][n][0])
        qs.append(h2 @ params["w3"][n] + params["b3"][n][0])
    unordered = jnp.stack(qs, axis=-1)                           # (B, A, N)
    q_values = jnp.mean(unordered, axis=-1)                      # (B, A)
    q_networks = jnp.tensordot(unordered, tm, axes=[[2], [0]])   # (B, A, K)
    return q_networks, unordered, q_values


if __name__ == "__main__":
    batch = 8
    input_dim = 32
    output_dim = 8            # num actions
    num_networks = 4
    hidden_sizes = [32, 32]   # fused hidden width = 4*32 = 128 lanes
    num_heads_out = 4         # columns of the left-stochastic transform matrix

    key = jax.random.PRNGKey(0)
    k_state, k_params, k_tm = jax.random.split(key, 3)

    state = jax.random.normal(k_state, (batch, input_dim), jnp.float32)
    params = _init_params(k_params, num_networks, input_dim, hidden_sizes, output_dim)

    # Left-stochastic transform matrix (REM): columns are convex-combination weights.
    tm_raw = jax.random.uniform(k_tm, (num_networks, num_heads_out), jnp.float32)
    transform_matrix = tm_raw / jnp.sum(tm_raw, axis=0, keepdims=True)

    # Weight fusion is per-parameter-update work, not per-forward work.
    fused, dims = prepare_fused_params(params, transform_matrix)
    fwd = jax.jit(multi_network_q_forward, static_argnames=("dims",))

    q_networks, unordered_q, q_values = jax.block_until_ready(
        fwd(state, fused, dims=dims))

    ref_qnets, ref_unordered, ref_qvals = _reference_forward(state, params, transform_matrix)
    # bf16 fused weights / activations -> loosened tolerances vs the f32 reference.
    assert jnp.allclose(unordered_q, ref_unordered, atol=3e-2, rtol=3e-2)
    assert jnp.allclose(q_values, ref_qvals, atol=3e-2, rtol=3e-2)
    assert jnp.allclose(q_networks, ref_qnets, atol=3e-2, rtol=3e-2)

    print("KERNEL_OK")
</pallas_src>

<mosaic_0001>
module attributes {stable_mosaic.version = 11 : i64} {
  func.func @_fused_mlp_kernel(%arg0: memref<8x32xf32, #tpu.memory_space<vmem>>, %arg1: memref<32x128xbf16, #tpu.memory_space<vmem>>, %arg2: memref<128x128xbf16, #tpu.memory_space<vmem>>, %arg3: memref<128x128xbf16, #tpu.memory_space<vmem>>, %arg4: memref<8x128xf32, #tpu.memory_space<vmem>>, %arg5: memref<8x128xf32, #tpu.memory_space<vmem>>) attributes {dimension_semantics = [], scalar_prefetch = 0 : i64, scratch_operands = 0 : i64, tpu.core_type = #tpu.core_type<tc>} {
    %c0 = arith.constant 0 : index
    %c0_0 = arith.constant 0 : index
    %0 = vector.load %arg0[%c0, %c0_0] : memref<8x32xf32, #tpu.memory_space<vmem>>, vector<8x32xf32>
    %1 = arith.truncf %0 : vector<8x32xf32> to vector<8x32xbf16>
    %c0_1 = arith.constant 0 : index
    %c0_2 = arith.constant 0 : index
    %2 = vector.load %arg1[%c0_1, %c0_2] : memref<32x128xbf16, #tpu.memory_space<vmem>>, vector<32x128xbf16>
    %cst = arith.constant dense<0.000000e+00> : vector<8x128xf32>
    %3 = tpu.matmul %1, %2, %cst {dimension_numbers = #tpu.dot_dimension_numbers<[1], [0], [0], [1], [0, 0, 1, 1], [], []>} : vector<8x32xbf16>, vector<32x128xbf16>, vector<8x128xf32> -> vector<8x128xf32>
    %c0_3 = arith.constant 0 : index
    %c0_4 = arith.constant 0 : index
    %4 = vector.load %arg4[%c0_3, %c0_4] : memref<8x128xf32, #tpu.memory_space<vmem>>, vector<1x128xf32>
    %5 = vector.broadcast %4 : vector<1x128xf32> to vector<8x128xf32>
    %6 = arith.addf %3, %5 : vector<8x128xf32>
    %cst_5 = arith.constant 0.000000e+00 : f32
    %7 = vector.broadcast %cst_5 : f32 to vector<8x128xf32>
    %8 = arith.maximumf %6, %7 : vector<8x128xf32>
    %9 = arith.truncf %8 : vector<8x128xf32> to vector<8x128xbf16>
    %c0_6 = arith.constant 0 : index
    %c0_7 = arith.constant 0 : index
    %10 = vector.load %arg2[%c0_6, %c0_7] : memref<128x128xbf16, #tpu.memory_space<vmem>>, vector<128x128xbf16>
    %cst_8 = arith.constant dense<0.000000e+00> : vector<8x128xf32>
    %11 = tpu.matmul %9, %10, %cst_8 {dimension_numbers = #tpu.dot_dimension_numbers<[1], [0], [0], [1], [0, 0, 1, 1], [], []>} : vector<8x128xbf16>, vector<128x128xbf16>, vector<8x128xf32> -> vector<8x128xf32>
    %c1 = arith.constant 1 : index
    %c0_9 = arith.constant 0 : index
    %12 = vector.load %arg4[%c1, %c0_9] : memref<8x128xf32, #tpu.memory_space<vmem>>, vector<1x128xf32>
    %13 = vector.broadcast %12 : vector<1x128xf32> to vector<8x128xf32>
    %14 = arith.addf %11, %13 : vector<8x128xf32>
    %cst_10 = arith.constant 0.000000e+00 : f32
    %15 = vector.broadcast %cst_10 : f32 to vector<8x128xf32>
    %16 = arith.maximumf %14, %15 : vector<8x128xf32>
    %17 = arith.truncf %16 : vector<8x128xf32> to vector<8x128xbf16>
    %c0_11 = arith.constant 0 : index
    %c0_12 = arith.constant 0 : index
    %18 = vector.load %arg3[%c0_11, %c0_12] : memref<128x128xbf16, #tpu.memory_space<vmem>>, vector<128x128xbf16>
    %cst_13 = arith.constant dense<0.000000e+00> : vector<8x128xf32>
    %19 = tpu.matmul %17, %18, %cst_13 {dimension_numbers = #tpu.dot_dimension_numbers<[1], [0], [0], [1], [0, 0, 1, 1], [], []>} : vector<8x128xbf16>, vector<128x128xbf16>, vector<8x128xf32> -> vector<8x128xf32>
    %c2 = arith.constant 2 : index
    %c0_14 = arith.constant 0 : index
    %20 = vector.load %arg4[%c2, %c0_14] : memref<8x128xf32, #tpu.memory_space<vmem>>, vector<1x128xf32>
    %21 = vector.broadcast %20 : vector<1x128xf32> to vector<8x128xf32>
    %22 = arith.addf %19, %21 : vector<8x128xf32>
    %c0_15 = arith.constant 0 : index
    %c0_16 = arith.constant 0 : index
    %23 = vector.load %arg5[%c0_15, %c0_16] : memref<8x128xf32, #tpu.memory_space<vmem>>, vector<8x128xf32>
    tpu.vector_store %arg5[%c0_15, %c0_16], %22 {strides = array<i32>} : memref<8x128xf32, #tpu.memory_space<vmem>>, vector<8x128xf32>,
    return
  }
}

</mosaic_0001>

<bundles_post_ra>
// kernel: multi_network_q_forward.1
= control target key start
LH: loop header
LB: loop body
LE: loop exit
PB: predicated region body
PF: predicated region fallthrough
CT: control target
= control target key end

     0   :  { %10 = vsyncpa [#allocation3], 0  ;;  %s696_s0 = inlined_call_operand.hbm [shape: f32[8,32], index: 0, kind: input, shape index: {}]   ;;  %s697_s1 = inlined_call_operand.hbm [shape: bf16[32,128], index: 1, kind: input, shape index: {}]   ;;  %s698_s2 = inlined_call_operand.hbm [shape: bf16[128,128], index: 2, kind: input, shape index: {}]   ;;  %s699_s3 = inlined_call_operand.hbm [shape: bf16[128,128], index: 3, kind: input, shape index: {}]   ;;  %s700_s4 = inlined_call_operand.hbm [shape: f32[8,128], index: 4, kind: input, shape index: {}]   ;;  %s701_s5 = inlined_call_operand.vmem [shape: f32[8,128], index: 5, kind: output, shape index: {}]  }
   0x1   :  { %11 = vsyncpa [#allocation5], 0 }
   0x2   :  { %12 = vsyncpa [#allocation8], 0  ;;  %s606_s18 = smov [#allocation4]  }
   0x3   :  { %s28_s19 = sshll.u32 %s606_s18, 4  ;;  %s29_s19 = int_to_ptr.vmem [resolvable:$true] %s28_s19 }
   0x4   :  { %s508_s20 = scalar_lea.vmem %s29_s19, 256  ;;  %p513_p1 = scmp.lt.s32.totalorder %s29_s19, %s29_s19 }
   0x5   :  { %p509_p0 = scmp.ne.s32.totalorder %s29_s19, %s508_s20  ;;  %p514_p2 = scmp.lt.s32.totalorder %s508_s20, %s508_s20 }
   0x7   :  { %p515_p3 = por %p514_p2, %p513_p1 }
   0x9   :  { %p516_p4 = pnand %p515_p3, %p509_p0 }
   0xb   :  { %519 = shalt.err (!%p516_p4)
}
   0xc   :  { %s607_s21 = smov 64   ;;  %s608_s22 = smov 4  }
   0xd   :  { %34 = dma.hbm_to_vmem [thread:$0]  %s697_s1, 256, %s29_s19, [#allocation5], %s607_s21, %s607_s21, %s608_s22  }
   0xe   :  { %s609_s25 = smov [#allocation7]   ;;  %s610_s27 = smov [#allocation2]  }
   0xf   :  { %s52_s26 = sshll.u32 %s609_s25, 4  ;;  %s19_s28 = sshll.u32 %s610_s27, 4  ;;  %s53_s26 = int_to_ptr.vmem [resolvable:$true] %s52_s26  ;;  %s20_s28 = int_to_ptr.vmem [resolvable:$true] %s19_s28 }
  0x10   :  { %s528_s29 = scalar_lea.vmem %s53_s26, 1024  ;;  %p533_p6 = scmp.lt.s32.totalorder %s53_s26, %s53_s26 }
  0x11   :  { %p529_p5 = scmp.ne.s32.totalorder %s53_s26, %s528_s29  ;;  %p534_p7 = scmp.lt.s32.totalorder %s528_s29, %s528_s29 }
  0x13   :  { %p535_p8 = por %p534_p7, %p533_p6 }
  0x15   :  { %p536_p9 = pnand %p535_p8, %p529_p5 }
  0x17   :  { %539 = shalt.err (!%p536_p9)
}
  0x18   :  { %58 = dma.hbm_to_vmem [thread:$0]  %s699_s3, 1024, %s53_s26, [#allocation8], %s607_s21, %s607_s21, %s608_s22  }
  0x19   :  { %s548_s1 = scalar_lea.vmem %s20_s28, 128  ;;  %p553_p11 = scmp.lt.s32.totalorder %s20_s28, %s20_s28 }
  0x1a   :  { %p549_p10 = scmp.ne.s32.totalorder %s20_s28, %s548_s1  ;;  %p554_p12 = scmp.lt.s32.totalorder %s548_s1, %s548_s1 }
  0x1c   :  { %p555_p13 = por %p554_p12, %p553_p11 }
  0x1e   :  { %p556_p0 = pnand %p555_p13, %p549_p10 }
  0x20   :  { %559 = shalt.err (!%p556_p0)
}
  0x21   :  { %22 = dma.hbm_to_vmem [thread:$0]  %s696_s0, 128, %s20_s28, [#allocation3]  }
  0x22   :  { %s611_s9 = smov [#allocation6]   ;;  %s612_s11 = smov [#allocation9]  }
  0x23   :  { %s40_s10 = sshll.u32 %s611_s9, 4  ;;  %s65_s12 = sshll.u32 %s612_s11, 4  ;;  %s41_s10 = int_to_ptr.vmem [resolvable:$true] %s40_s10  ;;  %s66_s12 = int_to_ptr.vmem [resolvable:$true] %s65_s12 }
  0x24   :  { %s568_s13 = scalar_lea.vmem %s41_s10, 1024  ;;  %p573_p2 = scmp.lt.s32.totalorder %s41_s10, %s41_s10 }
  0x25   :  { %p569_p1 = scmp.ne.s32.totalorder %s41_s10, %s568_s13  ;;  %p574_p3 = scmp.lt.s32.totalorder %s568_s13, %s568_s13 }
  0x27   :  { %p575_p4 = por %p574_p3, %p573_p2 }
  0x29   :  { %p576_p5 = pnand %p575_p4, %p569_p1 }
  0x2b   :  { %579 = shalt.err (!%p576_p5)
}
  0x2c   :  { %46 = dma.hbm_to_vmem [thread:$0]  %s698_s2, 1024, %s41_s10, [#allocation5], %s607_s21, %s607_s21, %s608_s22  }
  0x2d   :  { %s588_s0 = scalar_lea.vmem %s66_s12, 128  ;;  %p593_p7 = scmp.lt.s32.totalorder %s66_s12, %s66_s12 }
  0x2e   :  { %p589_p6 = scmp.ne.s32.totalorder %s66_s12, %s588_s0  ;;  %p594_p8 = scmp.lt.s32.totalorder %s588_s0, %s588_s0 }
  0x30   :  { %p595_p9 = por %p594_p8, %p593_p7 }
  0x32   :  { %p596_p10 = pnand %p595_p9, %p589_p6 }
  0x34   :  { %599 = shalt.err (!%p596_p10)
}
  0x35   :  { %68 = dma.hbm_to_vmem [thread:$0]  %s700_s4, 128, %s66_s12, [#allocation8]  }
  0x36   :  { %600 = dma.done.wait [#allocation3], 128  }
  0x37   :  { %601 = vsyncadd [#allocation3], 4294967168 }
  0x38   :  { %602 = dma.done.wait [#allocation5], 1280  }
  0x39   :  { %603 = vsyncadd [#allocation5], 4294966016 }
  0x3a   :  { %604 = dma.done.wait [#allocation8], 1152  }
  0x3b   :  { %605 = vsyncadd [#allocation8], 4294966144  ;;  %v613_v0 = vmov 0.0   ;;  %vm614_vm0 = vmmov 0   ;;  %v482_v1 = vld [vmem:[#allocation4 + $0x8] sm:$0xff]   ;;  %v483_v2 = vld [vmem:[#allocation4] sm:$0xff]  }
  0x3c   :  { %425 = vmatprep.subr.bf16.mxu0 %v613_v0  ;;  %429 = vmatprep.mubr.msk.bf16.mxu0 %vm614_vm0, %v613_v0  ;;  %v85_v3 = vld [vmem:[#allocation2] sm:$0xff]  ;;  %v484_v4 = vld [vmem:[#allocation6 + $0x38] sm:$0xff]   ;;  %v485_v6 = vld [vmem:[#allocation6 + $0x30] sm:$0xff]   ;;  %vm108_vm1 = vcmask 261120  }
  0x3d   :  { %433 = vmatprep.subr.bf16.mxu1 %v613_v0  ;;  %449 = vmatprep.mubr.msk.bf16.mxu1 %vm614_vm0, %v613_v0  ;;  %v86_v5 = vpack.c.bf16 %v85_v3, %v85_v3  ;;  %v486_v7 = vld [vmem:[#allocation6 + $0x28] sm:$0xff]   ;;  %v487_v8 = vld [vmem:[#allocation6 + $0x20] sm:$0xff]   ;;  %v488_v9 = vld [vmem:[#allocation6 + $0x18] sm:$0xff]  }
  0x3e   :  { %426 = vmatpush3.bf16.msra.mxu0 %v482_v1  ;;  %434 = vmatpush3.bf16.msra.mxu1 %v484_v4  ;;  %v489_v10 = vld [vmem:[#allocation6 + $0x10] sm:$0xff]   ;;  %v490_v11 = vld [vmem:[#allocation6 + $0x8] sm:$0xff]   ;;  %v491_v12 = vld [vmem:[#allocation6] sm:$0xff]  }
  0x3f   :  { %427 = vmatprep.subr.bf16.mxu0 %v613_v0  ;;  %435 = vmatprep.subr.bf16.mxu1 %v613_v0  ;;  %v492_v13 = vld [vmem:[#allocation7 + $0x38] sm:$0xff]   ;;  %v493_v14 = vld [vmem:[#allocation7 + $0x30] sm:$0xff]   ;;  %v494_v15 = vld [vmem:[#allocation7 + $0x28] sm:$0xff]  }
  0x40   :  { %v495_v16 = vld [vmem:[#allocation7 + $0x20] sm:$0xff]   ;;  %v496_v17 = vld [vmem:[#allocation7 + $0x18] sm:$0xff]   ;;  %v497_v18 = vld [vmem:[#allocation7 + $0x10] sm:$0xff]  }
  0x41   :  { %v382_v19 = vld [vmem:[#allocation9] ss:$0 sm:$0xff]  ;;  %v498_v27 = vld [vmem:[#allocation7 + $0x8] sm:$0xff]   ;;  %v386_v29 = vld [vmem:[#allocation9 + $0x1] ss:$0 sm:$0xff] }
  0x42   :  { %428 = vmatpush3.bf16.msra.mxu0 %v483_v2  ;;  %436 = vmatpush3.bf16.msra.mxu1 %v485_v6  ;;  %v499_v28 = vld [vmem:[#allocation7] sm:$0xff]  }
  0x43   :  { %453 = vmatprep.subr.bf16.mxu0 %v613_v0  ;;  %437 = vmatprep.subr.bf16.mxu1 %v613_v0  ;;  %v395_v37 = vld [vmem:[#allocation9 + $0x2] ss:$0 sm:$0xff] }
  0x45   :  { %430 = vmatmul.mubr.msk.bf16.vlgmr.msra.gmra.mxu0 %vm108_vm1, %v86_v5 }
  0x46   :  { %469 = vmatprep.mubr.msk.bf16.mxu0 %vm614_vm0, %v613_v0  ;;  %438 = vmatpush3.bf16.msra.mxu1 %v486_v7 }
  0x47   :  { %439 = vmatprep.subr.bf16.mxu1 %v613_v0  ;;  %454 = vmatpush3.bf16.msra.mxu0 %v492_v13 }
  0x48   :  { %455 = vmatprep.subr.bf16.mxu0 %v613_v0 }
  0x4a   :  { %440 = vmatpush3.bf16.msra.mxu1 %v487_v8 }
  0x4b   :  { %441 = vmatprep.subr.bf16.mxu1 %v613_v0  ;;  %456 = vmatpush3.bf16.msra.mxu0 %v493_v14 }
  0x4c   :  { %457 = vmatprep.subr.bf16.mxu0 %v613_v0 }
  0x4e   :  { %442 = vmatpush3.bf16.msra.mxu1 %v488_v9 }
  0x4f   :  { %443 = vmatprep.subr.bf16.mxu1 %v613_v0  ;;  %458 = vmatpush3.bf16.msra.mxu0 %v494_v15 }
  0x50   :  { %459 = vmatprep.subr.bf16.mxu0 %v613_v0 }
  0x52   :  { %444 = vmatpush3.bf16.msra.mxu1 %v489_v10 }
  0x53   :  { %445 = vmatprep.subr.bf16.mxu1 %v613_v0  ;;  %460 = vmatpush3.bf16.msra.mxu0 %v495_v16 }
  0x54   :  { %461 = vmatprep.subr.bf16.mxu0 %v613_v0 }
  0x56   :  { %446 = vmatpush3.bf16.msra.mxu1 %v490_v11 }
  0x57   :  { %447 = vmatprep.subr.bf16.mxu1 %v613_v0  ;;  %462 = vmatpush3.bf16.msra.mxu0 %v496_v17 }
  0x58   :  { %463 = vmatprep.subr.bf16.mxu0 %v613_v0 }
  0x5a   :  { %448 = vmatpush3.bf16.msra.mxu1 %v491_v12 }
  0x5b   :  { %464 = vmatpush3.bf16.msra.mxu0 %v497_v18 }
  0x5c   :  { %465 = vmatprep.subr.bf16.mxu0 %v613_v0 }
  0x5f   :  { %466 = vmatpush3.bf16.msra.mxu0 %v498_v27 }
  0x60   :  { %467 = vmatprep.subr.bf16.mxu0 %v613_v0 }
  0x63   :  { %468 = vmatpush3.bf16.msra.mxu0 %v499_v28 }
 0x105   :  { %v146_v20 = vpop.f32.mrf.mxu0 }
 0x106   :  { %v147_v21 = vadd.f32 %v382_v19, %v146_v20 }
 0x107   :  { %v431_v22 = vpop.f32.mrf.mxu0 }
 0x108   :  { %v152_v23 = vmax.f32 %v147_v21, 0.0 }
 0x109   :  { %v149_v24 = vpop.f32.mrf.mxu0 }
 0x10a   :  { %v153_v25 = vpack.c.bf16 %v152_v23, %v152_v23 }
 0x10b   :  { %v432_v26 = vpop.f32.mrf.mxu0 }
 0x10c   :  { %450 = vmatmul.mubr.bf16.vlgmr.msra.gmra.mxu1 %v153_v25 }
 0x1cc   :  { %v257_v30 = vpop.f32.mrf.mxu1 }
 0x1cd   :  { %v258_v31 = vadd.f32 %v386_v29, %v257_v30 }
 0x1ce   :  { %v451_v32 = vpop.f32.mrf.mxu1 }
 0x1cf   :  { %v263_v33 = vmax.f32 %v258_v31, 0.0 }
 0x1d0   :  { %v260_v34 = vpop.f32.mrf.mxu1 }
 0x1d1   :  { %v264_v35 = vpack.c.bf16 %v263_v33, %v263_v33 }
 0x1d2   :  { %v452_v36 = vpop.f32.mrf.mxu1 }
 0x1d3   :  { %470 = vmatmul.mubr.bf16.vlgmr.msra.gmra.mxu0 %v264_v35 }
 0x293   :  { %v368_v38 = vpop.f32.mrf.mxu0 }
 0x294   :  { %v369_v39 = vadd.f32 %v395_v37, %v368_v38 }
 0x295   :  { %v471_v40 = vpop.f32.mrf.mxu0 }
 0x296   :  { %374 = vst [vmem:[%s701_s5] sm:$0xff] %v369_v39 }
 0x297   :  { %v371_v41 = vpop.f32.mrf.mxu0 }
 0x299   :  { %v472_v42 = vpop.f32.mrf.mxu0 }
 0x29a   :  { %379 = vsyncpa [#allocation3], 1 }
 0x29b   :  { %380 = vsyncpa [#allocation5], 1 }
 0x29c   :  { %381 = vsyncpa [#allocation8], 1 }

</bundles_post_ra>
